<compile_context>
chip_gen: v7x
topology: tpu7x:2x2x1
jax: 0.10.0
libtpu: 0.0.40
codegen_flags: <defaults>
</compile_context>

<pallas_src>
import jax
import jax.numpy as jnp
from jax.experimental import pallas as pl
from jax.experimental.pallas import tpu as pltpu


def _round_up(x, m):
    return (x + m - 1) // m * m


def _ffn_kernel(x_ref, w1_ref, b1_ref, w2_ref, b2_ref, o_ref):
    # x:  [TM, D] (bf16)   w1: [D, H] (bf16)   b1: [1, H] (f32)
    # w2: [H, D] (bf16)    b2: [1, D] (f32)    o:  [TM, D]
    h = jnp.dot(x_ref[...], w1_ref[...], preferred_element_type=jnp.float32)
    h = jnp.maximum(h + b1_ref[...], 0.0)                # bias + ReLU in f32
    y = jnp.dot(h.astype(w2_ref.dtype), w2_ref[...],      # single downcast for MXU
                preferred_element_type=jnp.float32)
    o_ref[...] = (y + b2_ref[...]).astype(o_ref.dtype)


def feed_forward(x, w1, b1, w2, b2, *, tm=512, compute_dtype=jnp.bfloat16):
    """x: [B, T, n_embd] -> [B, T, n_embd]  (eval-mode FFN; dropout = identity)."""
    B, T, D = x.shape
    H = w1.shape[1]                                       # 4 * n_embd
    M = B * T

    # Row-tile size: multiple of 16 (bf16 sublane packing), never larger than
    # the padded problem. For real workloads sweep tm in 256..1024.
    TM = min(_round_up(tm, 16), _round_up(M, 16))
    Mp = _round_up(M, TM)

    x2 = x.reshape(M, D).astype(compute_dtype)
    if Mp != M:
        x2 = jnp.pad(x2, ((0, Mp - M), (0, 0)))           # pad rows, sliced off below
    w1c = w1.astype(compute_dtype)
    w2c = w2.astype(compute_dtype)
    b1_2 = b1.reshape(1, H).astype(jnp.float32)
    b2_2 = b2.reshape(1, D).astype(jnp.float32)

    itemsize = jnp.dtype(compute_dtype).itemsize
    cost = pl.CostEstimate(
        flops=4 * Mp * D * H,                             # two matmuls, 2*M*D*H each
        transcendentals=0,
        bytes_accessed=(Mp * D * itemsize                 # x tiles in
                        + (D * H + H * D) * itemsize      # resident weights
                        + (H + D) * 4                     # biases
                        + Mp * D * x.dtype.itemsize))     # output tiles

    out = pl.pallas_call(
        _ffn_kernel,
        out_shape=jax.ShapeDtypeStruct((Mp, D), x.dtype),
        grid_spec=pltpu.PrefetchScalarGridSpec(
            num_scalar_prefetch=0,
            grid=(Mp // TM,),
            in_specs=[
                pl.BlockSpec((TM, D), lambda i: (i, 0)),  # x: streamed row tiles
                pl.BlockSpec((D, H), lambda i: (0, 0)),   # w1: VMEM-resident
                pl.BlockSpec((1, H), lambda i: (0, 0)),   # b1: VMEM-resident
                pl.BlockSpec((H, D), lambda i: (0, 0)),   # w2: VMEM-resident
                pl.BlockSpec((1, D), lambda i: (0, 0)),   # b2: VMEM-resident
            ],
            out_specs=pl.BlockSpec((TM, D), lambda i: (i, 0)),
        ),
        compiler_params=pltpu.CompilerParams(
            # Row tiles are independent -> shard across both TCs on v7x megacore.
            dimension_semantics=("parallel",),
            # Room for weight residency + double-buffered row tiles on v5e/v6e;
            # within v7x's 64 MiB physical VMEM.
            vmem_limit_bytes=64 * 1024 * 1024,
        ),
        cost_estimate=cost,
    )(x2, w1c, b1_2, w2c, b2_2)

    if Mp != M:
        out = out[:M]
    return out.reshape(B, T, D)


def init_params(key, n_embd, dtype=jnp.float32):
    """PyTorch nn.Linear-style init: U(-1/sqrt(fan_in), 1/sqrt(fan_in))."""
    k1, k2, k3, k4 = jax.random.split(key, 4)
    hid = 4 * n_embd
    lim1 = 1.0 / jnp.sqrt(jnp.array(n_embd, dtype))
    lim2 = 1.0 / jnp.sqrt(jnp.array(hid, dtype))
    w1 = jax.random.uniform(k1, (n_embd, hid), dtype, -lim1, lim1)
    b1 = jax.random.uniform(k2, (hid,), dtype, -lim1, lim1)
    w2 = jax.random.uniform(k3, (hid, n_embd), dtype, -lim2, lim2)
    b2 = jax.random.uniform(k4, (n_embd,), dtype, -lim2, lim2)
    return w1, b1, w2, b2


if __name__ == "__main__":
    key = jax.random.PRNGKey(0)
    B, T, n_embd = 2, 16, 32          # hidden = 4*n_embd = 128, M = 32 rows
    dropout = 0.1                     # identity at inference

    kx, kp = jax.random.split(key)
    x = jax.random.normal(kx, (B, T, n_embd), jnp.float32)
    w1, b1, w2, b2 = init_params(kp, n_embd)

    # tm=16 exercises the multi-tile (grid > 1) pipelined path at small shapes;
    # real workloads use the default tm=512.
    y = feed_forward(x, w1, b1, w2, b2, tm=16)
    jax.block_until_ready(y)

    # Reference emulating the same bf16-inputs / f32-accumulation numerics.
    xb = x.reshape(-1, n_embd).astype(jnp.bfloat16)
    w1b = w1.astype(jnp.bfloat16)
    w2b = w2.astype(jnp.bfloat16)
    h = jnp.maximum(
        jnp.dot(xb, w1b, preferred_element_type=jnp.float32) + b1, 0.0)
    ref = jnp.dot(h.astype(jnp.bfloat16), w2b,
                  preferred_element_type=jnp.float32) + b2
    ref = ref.astype(x.dtype).reshape(B, T, n_embd)
    assert jnp.allclose(y, ref, atol=1e-3, rtol=1e-3), "mismatch vs reference"

    print("KERNEL_OK")
</pallas_src>

<mosaic_0001>
module attributes {stable_mosaic.version = 11 : i64} {
  func.func @_ffn_kernel(%arg0: i32, %arg1: memref<16x32xbf16, #tpu.memory_space<vmem>>, %arg2: memref<32x128xbf16, #tpu.memory_space<vmem>>, %arg3: memref<1x128xf32, #tpu.memory_space<vmem>>, %arg4: memref<128x32xbf16, #tpu.memory_space<vmem>>, %arg5: memref<1x32xf32, #tpu.memory_space<vmem>>, %arg6: memref<16x32xf32, #tpu.memory_space<vmem>>) attributes {dimension_semantics = [#tpu.dimension_semantics<parallel>], iteration_bounds = array<i64: 2>, scalar_prefetch = 0 : i64, scratch_operands = 0 : i64, tpu.core_type = #tpu.core_type<tc>, window_params = [{transform_indices = @transform_0, window_bounds = array<i64: 16, 32>}, {pipeline_mode = #tpu.pipeline_mode<synchronous>, transform_indices = @transform_1, window_bounds = array<i64: 32, 128>}, {pipeline_mode = #tpu.pipeline_mode<synchronous>, transform_indices = @transform_2, window_bounds = array<i64: 1, 128>}, {pipeline_mode = #tpu.pipeline_mode<synchronous>, transform_indices = @transform_3, window_bounds = array<i64: 128, 32>}, {pipeline_mode = #tpu.pipeline_mode<synchronous>, transform_indices = @transform_4, window_bounds = array<i64: 1, 32>}, {transform_indices = @transform_5, window_bounds = array<i64: 16, 32>}]} {
    %c0 = arith.constant 0 : index
    %c0_0 = arith.constant 0 : index
    %0 = vector.load %arg1[%c0, %c0_0] : memref<16x32xbf16, #tpu.memory_space<vmem>>, vector<16x32xbf16>
    %c0_1 = arith.constant 0 : index
    %c0_2 = arith.constant 0 : index
    %1 = vector.load %arg2[%c0_1, %c0_2] : memref<32x128xbf16, #tpu.memory_space<vmem>>, vector<32x128xbf16>
    %cst = arith.constant dense<0.000000e+00> : vector<16x128xf32>
    %2 = tpu.matmul %0, %1, %cst {dimension_numbers = #tpu.dot_dimension_numbers<[1], [0], [0], [1], [0, 0, 1, 1], [], []>} : vector<16x32xbf16>, vector<32x128xbf16>, vector<16x128xf32> -> vector<16x128xf32>
    %c0_3 = arith.constant 0 : index
    %c0_4 = arith.constant 0 : index
    %3 = vector.load %arg3[%c0_3, %c0_4] : memref<1x128xf32, #tpu.memory_space<vmem>>, vector<1x128xf32>
    %4 = vector.broadcast %3 : vector<1x128xf32> to vector<16x128xf32>
    %5 = arith.addf %2, %4 : vector<16x128xf32>
    %cst_5 = arith.constant 0.000000e+00 : f32
    %6 = vector.broadcast %cst_5 : f32 to vector<16x128xf32>
    %7 = arith.maximumf %5, %6 : vector<16x128xf32>
    %8 = arith.truncf %7 : vector<16x128xf32> to vector<16x128xbf16>
    %c0_6 = arith.constant 0 : index
    %c0_7 = arith.constant 0 : index
    %9 = vector.load %arg4[%c0_6, %c0_7] : memref<128x32xbf16, #tpu.memory_space<vmem>>, vector<128x32xbf16>
    %cst_8 = arith.constant dense<0.000000e+00> : vector<16x32xf32>
    %10 = tpu.matmul %8, %9, %cst_8 {dimension_numbers = #tpu.dot_dimension_numbers<[1], [0], [0], [1], [0, 0, 1, 1], [], []>} : vector<16x128xbf16>, vector<128x32xbf16>, vector<16x32xf32> -> vector<16x32xf32>
    %c0_9 = arith.constant 0 : index
    %c0_10 = arith.constant 0 : index
    %11 = vector.load %arg5[%c0_9, %c0_10] : memref<1x32xf32, #tpu.memory_space<vmem>>, vector<1x32xf32>
    %12 = vector.broadcast %11 : vector<1x32xf32> to vector<16x32xf32>
    %13 = arith.addf %10, %12 : vector<16x32xf32>
    %c0_11 = arith.constant 0 : index
    %c0_12 = arith.constant 0 : index
    %14 = vector.load %arg6[%c0_11, %c0_12] : memref<16x32xf32, #tpu.memory_space<vmem>>, vector<16x32xf32>
    tpu.vector_store %arg6[%c0_11, %c0_12], %13 {strides = array<i32>} : memref<16x32xf32, #tpu.memory_space<vmem>>, vector<16x32xf32>,
    return
  }
  func.func @transform_0(%arg0: i32) -> (i32, i32) {
    %c0_i32 = arith.constant 0 : i32
    %c0_i32_0 = arith.constant 0 : i32
    return %arg0, %c0_i32 : i32, i32
  }
  func.func @transform_1(%arg0: i32) -> (i32, i32) {
    %c0_i32 = arith.constant 0 : i32
    %c0_i32_0 = arith.constant 0 : i32
    %c0_i32_1 = arith.constant 0 : i32
    return %c0_i32, %c0_i32_0 : i32, i32
  }
  func.func @transform_2(%arg0: i32) -> (i32, i32) {
    %c0_i32 = arith.constant 0 : i32
    %c0_i32_0 = arith.constant 0 : i32
    %c0_i32_1 = arith.constant 0 : i32
    return %c0_i32, %c0_i32_0 : i32, i32
  }
  func.func @transform_3(%arg0: i32) -> (i32, i32) {
    %c0_i32 = arith.constant 0 : i32
    %c0_i32_0 = arith.constant 0 : i32
    %c0_i32_1 = arith.constant 0 : i32
    return %c0_i32, %c0_i32_0 : i32, i32
  }
  func.func @transform_4(%arg0: i32) -> (i32, i32) {
    %c0_i32 = arith.constant 0 : i32
    %c0_i32_0 = arith.constant 0 : i32
    %c0_i32_1 = arith.constant 0 : i32
    return %c0_i32, %c0_i32_0 : i32, i32
  }
  func.func @transform_5(%arg0: i32) -> (i32, i32) {
    %c0_i32 = arith.constant 0 : i32
    %c0_i32_0 = arith.constant 0 : i32
    return %arg0, %c0_i32 : i32, i32
  }
}

</mosaic_0001>

<bundles_post_ra>
// kernel: tpu_custom_call.1
= control target key start
LH: loop header
LB: loop body
LE: loop exit
PB: predicated region body
PF: predicated region fallthrough
CT: control target
= control target key end

     0   :  { %10 = vsyncpa [#allocation3], 0  ;;  %s1349_s0 = inlined_call_operand.hbm [shape: bf16[32,32], index: 0, kind: input, shape index: {}]   ;;  %s1350_s1 = inlined_call_operand.hbm [shape: bf16[32,128], index: 1, kind: input, shape index: {}]   ;;  %s1351_s2 = inlined_call_operand.hbm [shape: f32[1,128], index: 2, kind: input, shape index: {}]   ;;  %s1352_s3 = inlined_call_operand.hbm [shape: bf16[128,32], index: 3, kind: input, shape index: {}]   ;;  %s1353_s4 = inlined_call_operand.hbm [shape: f32[1,32], index: 4, kind: input, shape index: {}]   ;;  %s1354_s5 = inlined_call_operand.hbm [shape: f32[32,32], index: 5, kind: output, shape index: {}]  }
   0x1   :  { %12 = vsyncpa [#allocation3 + $0x1], 0 }
   0x2   :  { %13 = vsyncpa [#allocation6], 0 }
   0x3   :  { %14 = vsyncpa [#allocation9], 0 }
   0x4   :  { %15 = vsyncpa [#allocation4], 0 }
   0x5   :  { %17 = vsyncpa [#allocation4 + $0x1], 0  ;;  %s1059_s18 = smov 0   ;;  %s1061_s19 = smov 0  }
   0x6   :  { %s1063_s20 = smov 0   ;;  %s1065_s21 = smov 0  }
   0x7 LB: > { %s1080_s22 = sadd.s32 4294967295, %s1015_s21   ;;  %s617_s23 = sadd.s32 4294967294, %s1015_s21   ;;  %s1015_s21 = sphi %s1065_s21, %s1377_s21   ;;  %s1011_s20 = sphi %s1063_s20, %s1376_s20   ;;  %s1007_s19 = sphi %s1061_s19, %s1375_s19   ;;  %s1003_s18 = sphi %s1059_s18, %s1374_s18  }
   0x8   : > { %p43_p0 = scmp.ne.s32.totalorder %s1007_s19, %s1003_s18  ;;  %p1355_p1 = scmp.eq.s32.totalorder %s1080_s22, 0 }
   0x9   : > { %p157_p3 = scmp.eq.s32.totalorder %s617_s23, 1  ;;  %p618_p5 = scmp.ge.s32.totalorder %s1015_s21, 1 }
   0xa   : > { %p1089_p4 = por %p1355_p1, %p43_p0  ;;  %p164_p7 = scmp.lt.s32.totalorder %s1015_s21, 3 }
   0xb   : > { %p1094_p6 = por %p157_p3, %p43_p0  ;;  %s1017_s27 = smov [#allocation5]  }
   0xc   : > { %s1358_s24 = scalar_select %p1089_p4, 1, 0 }
   0xd   : > { %s1359_s25 = scalar_select %p1094_p6, 1, 0 }
   0xe   : > { %p1099_p8 = pnand %p618_p5, %p164_p7  ;;  %s176_s28 = sshll.u32 %s1017_s27, 4  ;;  %s1103_s28 = int_to_ptr.vmem [resolvable:$true] %s176_s28 }
   0xf   : > { %s1018_s30 = smov [#allocation8]   ;;  %s1019_s7 = smov [#allocation7]  }
  0x10   : > { %s1360_s26 = scalar_select %p1099_p8, 1, 0 }
  0x11   : > { %p715_p9 = pneg %p1099_p8  ;;  %s200_s6 = sshll.u32 %s1018_s30, 4  ;;  %s1114_s6 = int_to_ptr.vmem [resolvable:$true] %s200_s6 }
  0x12   : > { %s1116_s8 = sshll.u32 %s1019_s7, 4  ;;  %s799_s11 = scalar_lea.hbm %s1350_s1, 256  ;;  %s191_s8 = int_to_ptr.vmem [resolvable:$true] %s1116_s8 }
  0x13   : > { %p1110_p11 = pnand %p715_p9, %p1355_p1  ;;  %p800_p12 = scmp.ne.s32.totalorder %s1350_s1, %s799_s11 }
  0x14   : > { %p806_p5 = scmp.lt.u32.totalorder %s799_s11, %s1350_s1 }
  0x15   : > { %p1126_p13 = pneg %p1110_p11 }
  0x17   : > { %p802_p0 = pnand %p1126_p13, %p800_p12 }
  0x19   : > { %p803_p3 = pneg %p802_p0 }
  0x1b   : > { %p808_p7 = pnand %p806_p5, %p803_p3 }
  0x1d   : > { %811 = shalt.err (!%p808_p7)
}
  0x1e   : > { %s812_s17 = scalar_lea.vmem %s1103_s28, 256  ;;  %p820_p2 = scmp.lt.s32.totalorder %s1103_s28, %s1103_s28 }
  0x1f   : > { %p813_p9 = scmp.ne.s32.totalorder %s1103_s28, %s812_s17  ;;  %p821_p6 = scmp.lt.s32.totalorder %s812_s17, %s812_s17 }
  0x21   : > { %p815_p10 = pnand %p813_p9, %p1126_p13  ;;  %p822_p12 = por %p821_p6, %p820_p2 }
  0x23   : > { %p816_p1 = pneg %p815_p10 }
  0x25   : > { %p823_p0 = pnand %p822_p12, %p816_p1 }
  0x27   : > { %826 = shalt.err (!%p823_p0)
}
  0x28   : > { %s1020_s23 = smov 64   ;;  %s1021_s27 = smov 4  }
  0x29   : > { %718 = dma.hbm_to_vmem [thread:$0]  (!%p1110_p11), %s1350_s1, 256, %s1103_s28, [#allocation6], %s1020_s23, %s1020_s23, %s1021_s27  }
  0x2a   : > { %s827_s11 = scalar_lea.hbm %s1352_s3, 1024 }
  0x2b   : > { %p828_p1 = scmp.ne.s32.totalorder %s1352_s3, %s827_s11  ;;  %p834_p10 = scmp.lt.u32.totalorder %s827_s11, %s1352_s3 }
  0x2d   : > { %p830_p2 = pnand %p828_p1, %p1126_p13 }
  0x2f   : > { %p831_p6 = pneg %p830_p2 }
  0x31   : > { %p836_p3 = pnand %p834_p10, %p831_p6 }
  0x33   : > { %839 = shalt.err (!%p836_p3)
}
  0x34   : > { %s840_s28 = scalar_lea.vmem %s1114_s6, 1024  ;;  %p848_p12 = scmp.lt.s32.totalorder %s1114_s6, %s1114_s6 }
  0x35   : > { %p841_p5 = scmp.ne.s32.totalorder %s1114_s6, %s840_s28  ;;  %p849_p0 = scmp.lt.s32.totalorder %s840_s28, %s840_s28 }
  0x37   : > { %p843_p7 = pnand %p841_p5, %p1126_p13  ;;  %p850_p1 = por %p849_p0, %p848_p12 }
  0x39   : > { %p844_p9 = pneg %p843_p7 }
  0x3b   : > { %p851_p2 = pnand %p850_p1, %p844_p9 }
  0x3d   : > { %854 = shalt.err (!%p851_p2)
}
  0x3e   : > { %724 = dma.hbm_to_vmem [thread:$0]  (!%p1110_p11), %s1352_s3, 1024, %s1114_s6, [#allocation9], %s1020_s23, %s1020_s23, %s1021_s27  }
  0x3f   : > { %s855_s10 = scalar_lea.hbm %s1351_s2, 16 }
  0x40   : > { %p856_p6 = scmp.ne.s32.totalorder %s1351_s2, %s855_s10  ;;  %p862_p5 = scmp.lt.u32.totalorder %s855_s10, %s1351_s2 }
  0x42   : > { %p858_p10 = pnand %p856_p6, %p1126_p13 }
  0x44   : > { %p859_p3 = pneg %p858_p10 }
  0x46   : > { %p864_p7 = pnand %p862_p5, %p859_p3 }
  0x48   : > { %867 = shalt.err (!%p864_p7)
}
  0x49   : > { %s868_s16 = scalar_lea.vmem %s191_s8, 16  ;;  %s875_s6 = scalar_lea.vmem %s191_s8, 32 }
  0x4a   : > { %p869_p9 = scmp.ne.s32.totalorder %s191_s8, %s868_s16  ;;  %p876_p1 = scmp.lt.s32.totalorder %s191_s8, %s191_s8 }
  0x4b   : > { %p877_p2 = scmp.lt.s32.totalorder %s875_s6, %s868_s16 }
  0x4c   : > { %p871_p12 = pnand %p869_p9, %p1126_p13 }
  0x4d   : > { %p878_p4 = por %p877_p2, %p876_p1 }
  0x4e   : > { %p872_p0 = pneg %p871_p12 }
  0x50   : > { %p879_p8 = pnand %p878_p4, %p872_p0 }
  0x52   : > { %882 = shalt.err (!%p879_p8)
}
  0x53   : > { %721 = dma.hbm_to_vmem [thread:$0]  (!%p1110_p11), %s1351_s2, 16, %s191_s8, [#allocation6]  }
  0x54   : > { %s1022_s30 = smov [#allocation10]   ;;  %s883_s11 = scalar_lea.hbm %s1353_s4, 16 }
  0x55   : > { %s214_s7 = sshll.u32 %s1022_s30, 4  ;;  %p884_p6 = scmp.ne.s32.totalorder %s1353_s4, %s883_s11  ;;  %s215_s7 = int_to_ptr.vmem [resolvable:$true] %s214_s7 }
  0x56   : > { %p890_p10 = scmp.lt.u32.totalorder %s883_s11, %s1353_s4 }
  0x57   : > { %p886_p4 = pnand %p884_p6, %p1126_p13 }
  0x59   : > { %p887_p8 = pneg %p886_p4 }
  0x5b   : > { %p892_p3 = pnand %p890_p10, %p887_p8 }
  0x5d   : > { %895 = shalt.err (!%p892_p3)
}
  0x5e   : > { %s896_s8 = scalar_lea.vmem %s215_s7, 16  ;;  %s903_s6 = scalar_lea.vmem %s215_s7, 32 }
  0x5f   : > { %p897_p5 = scmp.ne.s32.totalorder %s215_s7, %s896_s8  ;;  %p904_p12 = scmp.lt.s32.totalorder %s215_s7, %s215_s7 }
  0x60   : > { %p905_p0 = scmp.lt.s32.totalorder %s903_s6, %s896_s8 }
  0x61   : > { %p899_p7 = pnand %p897_p5, %p1126_p13 }
  0x62   : > { %p906_p1 = por %p905_p0, %p904_p12 }
  0x63   : > { %p900_p9 = pneg %p899_p7 }
  0x65   : > { %p907_p2 = pnand %p906_p1, %p900_p9 }
  0x67   : > { %910 = shalt.err (!%p907_p2)
}
  0x68   : > { %727 = dma.hbm_to_vmem [thread:$0]  (!%p1110_p11), %s1353_s4, 16, %s215_s7, [#allocation9]  }
  0x69   : > { %s1214_s14 = sadd.s32 1, %s1015_s21   ;;  %s30_s30 = sadd.s32 1, %s1011_s20 }
  0x6a   : > { %s27_s29 = ssub.s32 %s1015_s21, %s1214_s14  ;;  %p37_p13 = scmp.ne.s32.totalorder %s1011_s20, %s1007_s19 }
  0x6b   : > { %p28_p6 = scmp.eq.s32.totalorder %s27_s29, 0  ;;  %p38_p4 = scmp.eq.s32.totalorder %s1015_s21, 0 }
  0x6c   : > { %p1363_p8 = scmp.eq.s32.totalorder %s1080_s22, 1  ;;  %p740_p3 = scmp.lt.s32.totalorder %s1015_s21, 2 }
  0x6d   : > { %s1230_s10 = scalar_select %p28_p6, %s1011_s20, %s30_s30  }
  0x6e   : > { %p1224_p10 = por %p1363_p8, %p37_p13  ;;  %p39_p5 = por %p38_p4, %p37_p13 }
  0x6f   : > { %s225_s11 = sand.u32 1, %s1011_s20   ;;  %s653_s7 = sshll.u32 %s1015_s21, 7 }
  0x70   : > { %s624_s12 = sshll.u32 %s225_s11, 3  ;;  %s1237_s16 = scalar_lea.hbm %s1349_s0, %s653_s7 }
  0x71   : > { %s229_s8 = scalar_lea.vmem [#allocation2], %s624_s12  ;;  %p1241_p11 = pnand %p740_p3, %p39_p5 }
  0x72   : > { %s236_s6 = sshll.u32 %s229_s8, 4  ;;  %s1245_s17 = scalar_lea.sflag [#allocation3], %s225_s11  ;;  %s1239_s6 = int_to_ptr.vmem [resolvable:$true] %s236_s6 }
  0x73   : > { %s911_s30 = scalar_lea.hbm %s1237_s16, 128  ;;  %p913_p9 = pneg %p1241_p11 }
  0x74   : > { %p912_p7 = scmp.ne.s32.totalorder %s1237_s16, %s911_s30  ;;  %s916_s7 = scalar_lea.hbm %s1349_s0, 256 }
  0x75   : > { %p917_p1 = scmp.lt.u32.totalorder %s1237_s16, %s1349_s0  ;;  %p918_p2 = scmp.lt.u32.totalorder %s916_s7, %s911_s30 }
  0x76   : > { %p914_p12 = pnand %p913_p9, %p912_p7  ;;  %p920_p6 = scmp.lt.u32.totalorder %s911_s30, %s1237_s16 }
  0x77   : > { %p919_p13 = por %p918_p2, %p917_p1 }
  0x78   : > { %p915_p0 = pneg %p914_p12 }
  0x79   : > { %p921_p4 = por %p920_p6, %p919_p13 }
  0x7b   : > { %p922_p8 = pnand %p921_p4, %p915_p0 }
  0x7d   : > { %925 = shalt.err (!%p922_p8)
}
  0x7e   : > { %s926_s11 = scalar_lea.vmem %s1239_s6, 128  ;;  %s1023_s8 = smov [#allocation2]  }
  0x7f   : > { %p927_p3 = scmp.ne.s32.totalorder %s1239_s6, %s926_s11  ;;  %s931_s29 = sshll.u32 %s1023_s8, 4  ;;  %s932_s29 = int_to_ptr.vmem [resolvable:$false] %s931_s29 }
  0x80   : > { %s933_s12 = scalar_lea.vmem %s932_s29, 256  ;;  %p934_p12 = scmp.lt.s32.totalorder %s1239_s6, %s932_s29 }
  0x81   : > { %p929_p5 = pnand %p927_p3, %p913_p9  ;;  %p935_p1 = scmp.lt.s32.totalorder %s933_s12, %s926_s11 }
  0x83   : > { %p930_p7 = pneg %p929_p5  ;;  %p936_p2 = por %p935_p1, %p934_p12 }
  0x85   : > { %p937_p13 = pnand %p936_p2, %p930_p7 }
  0x87   : > { %940 = shalt.err (!%p937_p13)
}
  0x88   : > { %731 = dma.hbm_to_vmem [thread:$0]  (!%p1241_p11), %s1237_s16, 128, %s1239_s6, %s1245_s17, %s1020_s23, %s1020_s23, %s1021_s27  }
  0x89   : > { %p1366_p9 = scmp.ne.s32.totalorder %s1360_s26, 0 }
  0x8a   : > { %s1279_s30 = sand.u32 (!%p1366_p9), 1, %s1007_s19   ;;  %p1367_p0 = scmp.ne.s32.totalorder (!%p1366_p9), %s1358_s24, 0 }
  0x8b   : > { %248 = sbr.rel (%p1366_p9) target bundleno = 614 (0x266), region = 40  ;;  %s628_s7 = sshll.u32 (!%p1366_p9), %s1279_s30, 3 }
  0x8c   : > { %s251_s13 = scalar_lea.sflag (!%p1366_p9), [#allocation3], %s1279_s30  ;;  %s254_s15 = scalar_lea.vmem (!%p1366_p9), [#allocation2], %s628_s7 }
  0x92   : > { %986 = dma.done.wait (%p1367_p0), %s251_s13, 128  }
  0x93   : > { %988 = vsyncadd (%p1367_p0), %s251_s13, 4294967168  ;;  %p1368_p6 = scmp.eq.s32.totalorder %s1080_s22, 0 }
  0x95   : > { %990 = dma.done.wait (%p1368_p6), [#allocation6], 272   ;;  %p1369_p11 = pmov %p1368_p6 }
  0x96   : > { %p1370_p4 = pmov %p1368_p6 }
  0x97   : > { %992 = vsyncadd (%p1369_p11), [#allocation6], 4294967024 }
  0x98   : > { %994 = dma.done.wait (%p1370_p4), [#allocation9], 1040   ;;  %p1371_p8 = pmov %p1370_p4 }
  0x99   : > { %v1024_v0 = vmov 0.0   ;;  %vm1025_vm0 = vmmov 0   ;;  %v788_v1 = vld [vmem:[#allocation5] sm:$0xff]   ;;  %v789_v2 = vld [vmem:[#allocation5 + $0x8] sm:$0xff]   ;;  %v791_v3 = vld [vmem:[#allocation8] sm:$0xff]   ;;  %vm330_vm1 = vcmask 261120  }
  0x9a   : > { %996 = vsyncadd (%p1371_p8), [#allocation9], 4294966256  ;;  %667 = vmatprep.subr.bf16.mxu0 %v1024_v0  ;;  %671 = vmatprep.mubr.msk.bf16.mxu0 %vm1025_vm0, %v1024_v0  ;;  %v790_v4 = vld [vmem:[%s254_s15] sm:$0xff]   ;;  %v793_v6 = vld [vmem:[#allocation8 + $0x10] sm:$0xff]   ;;  %s633_s24 = sshll.u32 %s1279_s30, 4  ;;  %s654_s27 = sshll.u32 %s1080_s22, 8 }
  0x9b   : > { %675 = vmatprep.subr.bf16.mxu1 %v1024_v0  ;;  %691 = vmatprep.mubr.msk.bf16.mxu1 %vm1025_vm0, %v1024_v0  ;;  %v792_v5 = vld [vmem:[#allocation8 + $0x8] sm:$0xff]   ;;  %v794_v7 = vld [vmem:[#allocation8 + $0x18] sm:$0xff]   ;;  %v795_v8 = vld [vmem:[#allocation8 + $0x20] sm:$0xff]   ;;  %s296_s26 = scalar_lea.vmem [#allocation11], %s633_s24  ;;  %s1303_s28 = scalar_lea.hbm %s1354_s5, %s654_s27 }
  0x9c   : > { %668 = vmatpush3.bf16.msra.mxu0 %v788_v1  ;;  %676 = vmatpush3.bf16.msra.mxu1 %v791_v3  ;;  %v796_v9 = vld [vmem:[#allocation8 + $0x28] sm:$0xff]   ;;  %v797_v10 = vld [vmem:[#allocation8 + $0x30] sm:$0xff]   ;;  %v798_v11 = vld [vmem:[#allocation8 + $0x38] sm:$0xff]   ;;  %s506_s23 = sshll.u32 %s296_s26, 4  ;;  %s493_s22 = scalar_lea.sflag [#allocation4], %s1279_s30  ;;  %s1298_s23 = int_to_ptr.vmem [resolvable:$true] %s506_s23 }
  0x9d   : > { %669 = vmatprep.subr.bf16.mxu0 %v1024_v0  ;;  %677 = vmatprep.subr.bf16.mxu1 %v1024_v0  ;;  %v634_v12 = vld [vmem:[#allocation7] ss:$0 sm:$0xff]  ;;  %v639_v22 = vld [vmem:[#allocation10] ss:$0 sm:$0xff]  ;;  %s941_s17 = scalar_lea.vmem %s1298_s23, 256  ;;  %s1026_s11 = smov [#allocation11]  }
  0x9e   : > { %p942_p3 = scmp.ne.s32.totalorder %s1298_s23, %s941_s17  ;;  %s945_s8 = sshll.u32 %s1026_s11, 4  ;;  %s946_s8 = int_to_ptr.vmem [resolvable:$false] %s945_s8 }
  0x9f   : > { %s947_s29 = scalar_lea.vmem %s946_s8, 512  ;;  %p948_p12 = scmp.lt.s32.totalorder %s1298_s23, %s946_s8 }
  0xa0   : > { %670 = vmatpush3.bf16.msra.mxu0 %v789_v2  ;;  %678 = vmatpush3.bf16.msra.mxu1 %v792_v5  ;;  %p943_p5 = pnand %p942_p3, %p1224_p10  ;;  %p949_p1 = scmp.lt.s32.totalorder %s947_s29, %s941_s17 }
  0xa1   : > { %679 = vmatprep.subr.bf16.mxu1 %v1024_v0 }
  0xa2   : > { %p944_p7 = pneg %p943_p5  ;;  %p950_p2 = por %p949_p1, %p948_p12 }
  0xa3   : > { %672 = vmatmul.mubr.msk.bf16.vlgmr.msra.gmra.mrb[0].mxu0 %vm330_vm1, %v790_v4 }
  0xa4   : > { %680 = vmatpush3.bf16.msra.mxu1 %v793_v6  ;;  %p951_p13 = pnand %p950_p2, %p944_p7 }
  0xa5   : > { %681 = vmatprep.subr.bf16.mxu1 %v1024_v0 }
  0xa8   : > { %682 = vmatpush3.bf16.msra.mxu1 %v794_v7 }
  0xa9   : > { %683 = vmatprep.subr.bf16.mxu1 %v1024_v0 }
  0xac   : > { %684 = vmatpush3.bf16.msra.mxu1 %v795_v8 }
  0xad   : > { %685 = vmatprep.subr.bf16.mxu1 %v1024_v0 }
  0xb0   : > { %686 = vmatpush3.bf16.msra.mxu1 %v796_v9 }
  0xb1   : > { %687 = vmatprep.subr.bf16.mxu1 %v1024_v0 }
  0xb4   : > { %688 = vmatpush3.bf16.msra.mxu1 %v797_v10 }
  0xb5   : > { %689 = vmatprep.subr.bf16.mxu1 %v1024_v0 }
  0xb8   : > { %690 = vmatpush3.bf16.msra.mxu1 %v798_v11 }
 0x176   : > { %v368_v13 = vpop.f32.mrb[0].mxu0 }
 0x177   : > { %v369_v14 = vadd.f32 %v634_v12, %v368_v13  ;;  %v673_v15 = vpop.f32.mrb[1].mxu0 }
 0x178   : > { %v371_v16 = vpop.f32.mrb[2].mxu0 }
 0x179   : > { %v372_v17 = vadd.f32 %v634_v12, %v371_v16  ;;  %v674_v18 = vpop.f32.mrb[3].mxu0  ;;  %v375_v19 = vmax.f32 %v369_v14, 0.0 }
 0x17b   : > { %v376_v20 = vmax.f32 %v372_v17, 0.0 }
 0x17d   : > { %v377_v21 = vpack.c.bf16 %v376_v20, %v375_v19 }
 0x17f   : > { %692 = vmatmul.mubr.bf16.vlgmr.msra.gmra.mrb[0].mxu1 %v377_v21 }
 0x252   : > { %v483_v23 = vpop.f32.mrb[0].mxu1 }
 0x253   : > { %v484_v24 = vadd.f32 %v639_v22, %v483_v23  ;;  %v693_v25 = vpop.f32.mrb[1].mxu1 }
 0x254   : > { %v486_v26 = vpop.f32.mrb[2].mxu1 }
 0x255   : > { %490 = vst.msk [vmem:[%s296_s26] sm:$0xff] %vm330_vm1, %v484_v24  ;;  %v487_v27 = vadd.f32 %v639_v22, %v486_v26  ;;  %v694_v28 = vpop.f32.mrb[3].mxu1 }
 0x257   : > { %491 = vst.msk [vmem:[%s296_s26 + $0x8] sm:$0xff] %vm330_vm1, %v487_v27 }
 0x258   : > { %954 = shalt.err (!%p951_p13)
}
 0x259   : > { %s955_s12 = scalar_lea.hbm %s1303_s28, 256  ;;  %s959_s15 = scalar_lea.hbm %s1354_s5, 512 }
 0x25a   : > { %p956_p9 = scmp.ne.s32.totalorder %s1303_s28, %s955_s12  ;;  %p960_p11 = scmp.lt.u32.totalorder %s1303_s28, %s1354_s5 }
 0x25b   : > { %p961_p4 = scmp.lt.u32.totalorder %s959_s15, %s955_s12  ;;  %p963_p3 = scmp.lt.u32.totalorder %s955_s12, %s1303_s28 }
 0x25c   : > { %p957_p0 = pnand %p956_p9, %p1224_p10 }
 0x25d   : > { %p962_p8 = por %p961_p4, %p960_p11 }
 0x25e   : > { %p958_p6 = pneg %p957_p0 }
 0x25f   : > { %p964_p5 = por %p963_p3, %p962_p8 }
 0x261   : > { %p965_p7 = pnand %p964_p5, %p958_p6 }
 0x263   : > { %968 = shalt.err (!%p965_p7)
}
 0x264   : > { %s1027_s27 = smov 128   ;;  %s1028_s16 = smov 8  }
 0x265   : > { %713 = dma.vmem_to_hbm [thread:$0]  (%p1224_p10), %s1298_s23, 256, %s1303_s28, %s493_s22, %s1027_s27, %s1027_s27, %s1028_s16  }
 0x266 PF: > { %s521_s6 = sand.u32 1, %s1003_s18   ;;  %p1372_p12 = scmp.ne.s32.totalorder %s1359_s25, 0 }
 0x267   : > { %p1373_p1 = scmp.ge.s32.totalorder %s1015_s21, 2  ;;  %s522_s17 = scalar_lea.sflag [#allocation4], %s521_s6 }
 0x269   : > { %p733_p2 = pnand %p1373_p1, %p1372_p12 }
 0x26b   : > { %998 = dma.done.wait (!%p733_p2), %s522_s17, 256  }
 0x26c   : > { %1000 = vsyncadd (!%p733_p2), %s522_s17, 4294967040  ;;  %p20_p13 = scmp.ge.s32.totalorder %s1214_s14, 4   ;;  %s1374_s18 = smov %s1007_s19 }
 0x26d   : > { %s1375_s19 = smov %s1011_s20  ;;  %s1376_s20 = smov %s1230_s10 }
 0x26e   : > { %s1377_s21 = smov %s1214_s14  ;;  %22 = sbr.rel (!%p20_p13) target bundleno = 7 (0x7), region = 101 }
 0x275   :  { %527 = vsyncpa [#allocation3], 1 }
 0x276   :  { %529 = vsyncpa [#allocation3 + $0x1], 1 }
 0x277   :  { %530 = vsyncpa [#allocation6], 1 }
 0x278   :  { %531 = vsyncpa [#allocation9], 1 }
 0x279   :  { %532 = vsyncpa [#allocation4], 1 }
 0x27a   :  { %534 = vsyncpa [#allocation4 + $0x1], 1 }

</bundles_post_ra>
